<compile_context>
chip_gen: v7x
topology: tpu7x:2x2x1
jax: 0.10.0
libtpu: 0.0.40
codegen_flags: <defaults>
</compile_context>

<pallas_src>
import functools

import numpy as np
import jax
import jax.numpy as jnp
from jax.experimental import pallas as pl
from jax.experimental.pallas import tpu as pltpu

# ----------------------------- config (small) ---------------------------------
INPUT_DIM   = 40    # vocab size
EMB_DIM     = 16
HID_DIM     = 32
OUTPUT_DIM  = 24
N_LAYERS    = 3     # 1 s_conv block + (n_layers-1) SHARED c_conv blocks
KERNEL_SIZE = 3
SRC_LEN     = 16
BATCH       = 2
BN_EPS      = 1e-5


# -------------------------- host-side constant prep ---------------------------

def positional_encoding_np(position, d_model):
    """Exact replica of the PyTorch positional_encoding helper -> (S, E)."""
    angles = np.arange(position)[:, None] * 1.0 / np.power(
        10000, 2 * (np.arange(d_model)[None, :] // 2) / np.float32(d_model))
    angles[:, 0::2] = np.sin(angles[:, 0::2])
    angles[:, 1::2] = np.cos(angles[:, 1::2])
    return jnp.asarray(angles, dtype=jnp.float32)


def make_conv_mask(batch, seq, ksize):
    """mask[i, k] = 1 if flat row i (= b*seq + s) may use its tap-k neighbour
    (i.e. s + (k - pad) stays inside the same sequence), else 0."""
    pad = ksize // 2
    m = np.zeros((batch * seq, ksize), np.float32)
    for i in range(batch * seq):
        s = i % seq
        for k in range(ksize):
            if 0 <= s + (k - pad) < seq:
                m[i, k] = 1.0
    return jnp.asarray(m)


# ------------------------------ fused Pallas kernel ----------------------------

def encoder_cnn_kernel(ids_ref, emb_ref, pos_ref, mask_ref,
                       w0_ref, b0_ref, s0_ref, t0_ref,
                       w1_ref, b1_ref, s1_ref, t1_ref,
                       wout_ref, bout_ref, out_ref,
                       *, batch, seq, vocab, n_layers, ksize):
    bs = batch * seq
    pad = ksize // 2

    # ---- embedding lookup fused as one-hot @ table (single MXU matmul) ----
    ids = ids_ref[...]                                            # (bs, 1) int32, batch-major
    lane = jax.lax.broadcasted_iota(jnp.int32, (bs, vocab), 1)
    one_hot = (lane == ids).astype(jnp.float32)                   # (bs, V)
    x = jnp.dot(one_hot, emb_ref[...],
                preferred_element_type=jnp.float32)               # (bs, E)

    # ---- positional encoding (pre-tiled on host to (bs, E)) ----
    x = x + pos_ref[...]

    mask = mask_ref[...]                                          # (bs, K)

    def conv_bn_relu(xin, wflat_ref, b_ref_, scale_ref_, shift_ref_):
        # xin: (bs, Cin); wflat: (K*Cin, Cout) pre-flattened (k-major) on host;
        # bias/scale/shift: (1, Cout).  Build the K taps with sublane shifts and
        # stack them along the lane axis so the whole block is ONE matmul.
        taps = []
        for k in range(ksize):
            d = k - pad
            if d == 0:
                taps.append(xin)                                  # center tap: no shift/mask
            else:
                # static roll lowers to sublane slices + concat; wrapped rows and
                # cross-sequence rows are zeroed by the mask column.
                shifted = jnp.roll(xin, -d, axis=0)
                taps.append(shifted * mask[:, k:k + 1])
        xk = jnp.concatenate(taps, axis=1)                        # (bs, K*Cin)
        acc = jnp.dot(xk, wflat_ref[...],
                      preferred_element_type=jnp.float32) + b_ref_[...]
        acc = jnp.maximum(acc, 0.0)                               # ReLU after Conv1d
        acc = acc * scale_ref_[...] + shift_ref_[...]             # BatchNorm (eval, folded)
        acc = jnp.maximum(acc, 0.0)                               # ReLU after BatchNorm
        # ReLU after the Dropout module is identity on non-negative input.
        return acc

    h = conv_bn_relu(x, w0_ref, b0_ref, s0_ref, t0_ref)           # s_conv block
    for _ in range(n_layers - 1):                                 # shared c_conv block
        h = conv_bn_relu(h, w1_ref, b1_ref, s1_ref, t1_ref)

    # ---- AdaptiveMaxPool1d(1) over the sequence, per batch element ----
    pooled = jnp.concatenate(
        [jnp.max(h[b * seq:(b + 1) * seq, :], axis=0, keepdims=True)
         for b in range(batch)], axis=0)                          # (B, H)

    # ---- output linear ----
    out_ref[...] = (jnp.dot(pooled, wout_ref[...],
                            preferred_element_type=jnp.float32) + bout_ref[...])


# --------------------------------- wrapper ------------------------------------

def encoder_cnn_forward(params, src):
    """src: (S, B) int32 token ids (seq-major, like the PyTorch module)."""
    S, B = src.shape
    V, E = params["embedding"].shape
    K = params["w0"].shape[0]
    H = params["w0"].shape[2]
    O = params["wout"].shape[1]
    bs = B * S

    # host-side prep (cheap constants / layout plumbing, no compute hoisting)
    ids = jnp.transpose(src).reshape(bs, 1).astype(jnp.int32)     # batch-major flat ids
    pos = jnp.tile(positional_encoding_np(S, E), (B, 1))          # (bs, E), matches b-major rows
    mask = make_conv_mask(B, S, K)

    # fold BatchNorm (eval) into scale/shift
    s0 = params["bn0_gamma"] / jnp.sqrt(params["bn0_var"] + BN_EPS)
    t0 = params["bn0_beta"] - params["bn0_mean"] * s0
    s1 = params["bn1_gamma"] / jnp.sqrt(params["bn1_var"] + BN_EPS)
    t1 = params["bn1_beta"] - params["bn1_mean"] * s1

    # pre-flatten conv weights (K, Cin, Cout) -> (K*Cin, Cout), k-major rows
    w0f = params["w0"].reshape(K * E, H)
    w1f = params["w1"].reshape(K * H, H)

    kernel = functools.partial(encoder_cnn_kernel, batch=B, seq=S, vocab=V,
                               n_layers=N_LAYERS, ksize=K)

    def full(shape):
        return pl.BlockSpec(shape, lambda i: (0,) * len(shape))

    return pl.pallas_call(
        kernel,
        out_shape=jax.ShapeDtypeStruct((B, O), jnp.float32),
        grid=(1,),
        in_specs=[
            full((bs, 1)),          # ids
            full((V, E)),           # embedding table
            full((bs, E)),          # positional encoding (pre-tiled)
            full((bs, K)),          # conv validity mask
            full((K * E, H)), full((1, H)), full((1, H)), full((1, H)),  # s_conv block
            full((K * H, H)), full((1, H)), full((1, H)), full((1, H)),  # c_conv block
            full((H, O)), full((1, O)),                                  # lin_out
        ],
        out_specs=full((B, O)),
        compiler_params=pltpu.CompilerParams(dimension_semantics=("arbitrary",)),
    )(ids, params["embedding"], pos, mask,
      w0f, params["b0"].reshape(1, H), s0.reshape(1, H), t0.reshape(1, H),
      w1f, params["b1"].reshape(1, H), s1.reshape(1, H), t1.reshape(1, H),
      params["wout"], params["bout"].reshape(1, O))


# ----------------------------- pure-JAX reference ------------------------------

def encoder_cnn_ref(params, src):
    S, B = src.shape
    E = params["embedding"].shape[1]
    pos = positional_encoding_np(S, E)
    emb = params["embedding"][src] + pos[:, None, :]              # (S, B, E)
    x = jnp.transpose(emb, (1, 2, 0))                             # (B, E, S)

    def block(x, w_kio, b, gamma, beta, mean, var):
        pad = w_kio.shape[0] // 2
        w_oik = jnp.transpose(w_kio, (2, 1, 0))                   # (Cout, Cin, K)
        y = jax.lax.conv_general_dilated(
            x, w_oik, window_strides=(1,), padding=[(pad, pad)],
            dimension_numbers=("NCH", "OIH", "NCH"))
        y = y + b[None, :, None]
        y = jnp.maximum(y, 0.0)
        y = ((y - mean[None, :, None])
             * (gamma / jnp.sqrt(var + BN_EPS))[None, :, None]
             + beta[None, :, None])
        y = jnp.maximum(y, 0.0)
        return y

    x = block(x, params["w0"], params["b0"], params["bn0_gamma"],
              params["bn0_beta"], params["bn0_mean"], params["bn0_var"])
    for _ in range(N_LAYERS - 1):                                  # shared weights
        x = block(x, params["w1"], params["b1"], params["bn1_gamma"],
                  params["bn1_beta"], params["bn1_mean"], params["bn1_var"])
    pooled = jnp.max(x, axis=2)                                    # (B, H)
    return pooled @ params["wout"] + params["bout"]


# ------------------------------- params / main ---------------------------------

def init_params(key):
    ks = jax.random.split(key, 15)
    s = 0.1
    return {
        "embedding": jax.random.normal(ks[0], (INPUT_DIM, EMB_DIM), jnp.float32) * s,
        # conv weights stored pre-transposed for the kernel: (K, Cin, Cout)
        "w0": jax.random.normal(ks[1], (KERNEL_SIZE, EMB_DIM, HID_DIM), jnp.float32) * s,
        "b0": jax.random.normal(ks[2], (HID_DIM,), jnp.float32) * s,
        "bn0_gamma": 1.0 + jax.random.normal(ks[3], (HID_DIM,), jnp.float32) * s,
        "bn0_beta": jax.random.normal(ks[4], (HID_DIM,), jnp.float32) * s,
        "bn0_mean": jax.random.normal(ks[5], (HID_DIM,), jnp.float32) * s,
        "bn0_var": 1.0 + jnp.abs(jax.random.normal(ks[6], (HID_DIM,), jnp.float32)) * s,
        "w1": jax.random.normal(ks[7], (KERNEL_SIZE, HID_DIM, HID_DIM), jnp.float32) * s,
        "b1": jax.random.normal(ks[8], (HID_DIM,), jnp.float32) * s,
        "bn1_gamma": 1.0 + jax.random.normal(ks[9], (HID_DIM,), jnp.float32) * s,
        "bn1_beta": jax.random.normal(ks[10], (HID_DIM,), jnp.float32) * s,
        "bn1_mean": jax.random.normal(ks[11], (HID_DIM,), jnp.float32) * s,
        "bn1_var": 1.0 + jnp.abs(jax.random.normal(ks[12], (HID_DIM,), jnp.float32)) * s,
        # lin_out weight pre-transposed: (H, O)
        "wout": jax.random.normal(ks[13], (HID_DIM, OUTPUT_DIM), jnp.float32) * s,
        "bout": jax.random.normal(ks[14], (OUTPUT_DIM,), jnp.float32) * s,
    }


if __name__ == "__main__":
    key = jax.random.PRNGKey(0)
    k_src, k_par = jax.random.split(key)

    src = jax.random.randint(k_src, (SRC_LEN, BATCH), 0, INPUT_DIM, dtype=jnp.int32)
    params = init_params(k_par)

    out = encoder_cnn_forward(params, src)
    jax.block_until_ready(out)

    out_ref = encoder_cnn_ref(params, src)
    assert out.shape == (BATCH, OUTPUT_DIM)
    diff = float(jnp.max(jnp.abs(out - out_ref)))
    assert jnp.allclose(out, out_ref, rtol=2e-2, atol=2e-2), f"max abs diff {diff}"

    print("KERNEL_OK")
</pallas_src>

<mosaic_0001>
module attributes {stable_mosaic.version = 11 : i64} {
  func.func @encoder_cnn_kernel(%arg0: i32, %arg1: memref<32x1xi32, #tpu.memory_space<vmem>>, %arg2: memref<40x16xf32, #tpu.memory_space<vmem>>, %arg3: memref<32x16xf32, #tpu.memory_space<vmem>>, %arg4: memref<32x3xf32, #tpu.memory_space<vmem>>, %arg5: memref<48x32xf32, #tpu.memory_space<vmem>>, %arg6: memref<1x32xf32, #tpu.memory_space<vmem>>, %arg7: memref<1x32xf32, #tpu.memory_space<vmem>>, %arg8: memref<1x32xf32, #tpu.memory_space<vmem>>, %arg9: memref<96x32xf32, #tpu.memory_space<vmem>>, %arg10: memref<1x32xf32, #tpu.memory_space<vmem>>, %arg11: memref<1x32xf32, #tpu.memory_space<vmem>>, %arg12: memref<1x32xf32, #tpu.memory_space<vmem>>, %arg13: memref<32x24xf32, #tpu.memory_space<vmem>>, %arg14: memref<1x24xf32, #tpu.memory_space<vmem>>, %arg15: memref<2x24xf32, #tpu.memory_space<vmem>>) attributes {dimension_semantics = [#tpu.dimension_semantics<arbitrary>], iteration_bounds = array<i64: 1>, scalar_prefetch = 0 : i64, scratch_operands = 0 : i64, tpu.core_type = #tpu.core_type<tc>, window_params = [{pipeline_mode = #tpu.pipeline_mode<synchronous>, transform_indices = @transform_0, window_bounds = array<i64: 32, 1>}, {pipeline_mode = #tpu.pipeline_mode<synchronous>, transform_indices = @transform_1, window_bounds = array<i64: 40, 16>}, {pipeline_mode = #tpu.pipeline_mode<synchronous>, transform_indices = @transform_2, window_bounds = array<i64: 32, 16>}, {pipeline_mode = #tpu.pipeline_mode<synchronous>, transform_indices = @transform_3, window_bounds = array<i64: 32, 3>}, {pipeline_mode = #tpu.pipeline_mode<synchronous>, transform_indices = @transform_4, window_bounds = array<i64: 48, 32>}, {pipeline_mode = #tpu.pipeline_mode<synchronous>, transform_indices = @transform_5, window_bounds = array<i64: 1, 32>}, {pipeline_mode = #tpu.pipeline_mode<synchronous>, transform_indices = @transform_6, window_bounds = array<i64: 1, 32>}, {pipeline_mode = #tpu.pipeline_mode<synchronous>, transform_indices = @transform_7, window_bounds = array<i64: 1, 32>}, {pipeline_mode = #tpu.pipeline_mode<synchronous>, transform_indices = @transform_8, window_bounds = array<i64: 96, 32>}, {pipeline_mode = #tpu.pipeline_mode<synchronous>, transform_indices = @transform_9, window_bounds = array<i64: 1, 32>}, {pipeline_mode = #tpu.pipeline_mode<synchronous>, transform_indices = @transform_10, window_bounds = array<i64: 1, 32>}, {pipeline_mode = #tpu.pipeline_mode<synchronous>, transform_indices = @transform_11, window_bounds = array<i64: 1, 32>}, {pipeline_mode = #tpu.pipeline_mode<synchronous>, transform_indices = @transform_12, window_bounds = array<i64: 32, 24>}, {pipeline_mode = #tpu.pipeline_mode<synchronous>, transform_indices = @transform_13, window_bounds = array<i64: 1, 24>}, {pipeline_mode = #tpu.pipeline_mode<synchronous>, transform_indices = @transform_14, window_bounds = array<i64: 2, 24>}]} {
    %c0 = arith.constant 0 : index
    %c0_0 = arith.constant 0 : index
    %0 = vector.load %arg1[%c0, %c0_0] : memref<32x1xi32, #tpu.memory_space<vmem>>, vector<32x1xi32>
    %1 = tpu.iota {dimensions = array<i32: 1>} : vector<32x40xi32>
    %2 = vector.broadcast %0 : vector<32x1xi32> to vector<32x40xi32>
    %3 = arith.cmpi eq, %1, %2 : vector<32x40xi32>
    %4 = arith.extui %3 : vector<32x40xi1> to vector<32x40xi32>
    %5 = arith.sitofp %4 : vector<32x40xi32> to vector<32x40xf32>
    %c0_1 = arith.constant 0 : index
    %c0_2 = arith.constant 0 : index
    %6 = vector.load %arg2[%c0_1, %c0_2] : memref<40x16xf32, #tpu.memory_space<vmem>>, vector<40x16xf32>
    %cst = arith.constant dense<0.000000e+00> : vector<32x16xf32>
    %7 = tpu.matmul %5, %6, %cst {dimension_numbers = #tpu.dot_dimension_numbers<[1], [0], [0], [1], [0, 0, 1, 1], [], []>} : vector<32x40xf32>, vector<40x16xf32>, vector<32x16xf32> -> vector<32x16xf32>
    %c0_3 = arith.constant 0 : index
    %c0_4 = arith.constant 0 : index
    %8 = vector.load %arg3[%c0_3, %c0_4] : memref<32x16xf32, #tpu.memory_space<vmem>>, vector<32x16xf32>
    %9 = arith.addf %7, %8 : vector<32x16xf32>
    %c0_5 = arith.constant 0 : index
    %c0_6 = arith.constant 0 : index
    %10 = vector.load %arg4[%c0_5, %c0_6] : memref<32x3xf32, #tpu.memory_space<vmem>>, vector<32x3xf32>
    %11 = vector.extract_strided_slice %9 {offsets = [31, 0], sizes = [1, 16], strides = [1, 1]} : vector<32x16xf32> to vector<1x16xf32>
    %12 = vector.extract_strided_slice %9 {offsets = [0, 0], sizes = [31, 16], strides = [1, 1]} : vector<32x16xf32> to vector<31x16xf32>
    %13 = tpu.concatenate %11, %12 in 0 : vector<1x16xf32>, vector<31x16xf32> -> vector<32x16xf32>
    %14 = vector.extract_strided_slice %10 {offsets = [0, 0], sizes = [32, 1], strides = [1, 1]} : vector<32x3xf32> to vector<32x1xf32>
    %15 = vector.broadcast %14 : vector<32x1xf32> to vector<32x16xf32>
    %16 = arith.mulf %13, %15 : vector<32x16xf32>
    %17 = vector.extract_strided_slice %9 {offsets = [1, 0], sizes = [31, 16], strides = [1, 1]} : vector<32x16xf32> to vector<31x16xf32>
    %18 = vector.extract_strided_slice %9 {offsets = [0, 0], sizes = [1, 16], strides = [1, 1]} : vector<32x16xf32> to vector<1x16xf32>
    %19 = tpu.concatenate %17, %18 in 0 : vector<31x16xf32>, vector<1x16xf32> -> vector<32x16xf32>
    %20 = vector.extract_strided_slice %10 {offsets = [0, 2], sizes = [32, 1], strides = [1, 1]} : vector<32x3xf32> to vector<32x1xf32>
    %21 = vector.broadcast %20 : vector<32x1xf32> to vector<32x16xf32>
    %22 = arith.mulf %19, %21 : vector<32x16xf32>
    %23 = tpu.concatenate %16, %9, %22 in 1 : vector<32x16xf32>, vector<32x16xf32>, vector<32x16xf32> -> vector<32x48xf32>
    %c0_7 = arith.constant 0 : index
    %c0_8 = arith.constant 0 : index
    %24 = vector.load %arg5[%c0_7, %c0_8] : memref<48x32xf32, #tpu.memory_space<vmem>>, vector<48x32xf32>
    %cst_9 = arith.constant dense<0.000000e+00> : vector<32x32xf32>
    %25 = tpu.matmul %23, %24, %cst_9 {dimension_numbers = #tpu.dot_dimension_numbers<[1], [0], [0], [1], [0, 0, 1, 1], [], []>} : vector<32x48xf32>, vector<48x32xf32>, vector<32x32xf32> -> vector<32x32xf32>
    %c0_10 = arith.constant 0 : index
    %c0_11 = arith.constant 0 : index
    %26 = vector.load %arg6[%c0_10, %c0_11] : memref<1x32xf32, #tpu.memory_space<vmem>>, vector<1x32xf32>
    %27 = vector.broadcast %26 : vector<1x32xf32> to vector<32x32xf32>
    %28 = arith.addf %25, %27 : vector<32x32xf32>
    %cst_12 = arith.constant 0.000000e+00 : f32
    %29 = vector.broadcast %cst_12 : f32 to vector<32x32xf32>
    %30 = arith.maximumf %28, %29 : vector<32x32xf32>
    %c0_13 = arith.constant 0 : index
    %c0_14 = arith.constant 0 : index
    %31 = vector.load %arg7[%c0_13, %c0_14] : memref<1x32xf32, #tpu.memory_space<vmem>>, vector<1x32xf32>
    %32 = vector.broadcast %31 : vector<1x32xf32> to vector<32x32xf32>
    %33 = arith.mulf %30, %32 : vector<32x32xf32>
    %c0_15 = arith.constant 0 : index
    %c0_16 = arith.constant 0 : index
    %34 = vector.load %arg8[%c0_15, %c0_16] : memref<1x32xf32, #tpu.memory_space<vmem>>, vector<1x32xf32>
    %35 = vector.broadcast %34 : vector<1x32xf32> to vector<32x32xf32>
    %36 = arith.addf %33, %35 : vector<32x32xf32>
    %cst_17 = arith.constant 0.000000e+00 : f32
    %37 = vector.broadcast %cst_17 : f32 to vector<32x32xf32>
    %38 = arith.maximumf %36, %37 : vector<32x32xf32>
    %39 = vector.extract_strided_slice %38 {offsets = [31, 0], sizes = [1, 32], strides = [1, 1]} : vector<32x32xf32> to vector<1x32xf32>
    %40 = vector.extract_strided_slice %38 {offsets = [0, 0], sizes = [31, 32], strides = [1, 1]} : vector<32x32xf32> to vector<31x32xf32>
    %41 = tpu.concatenate %39, %40 in 0 : vector<1x32xf32>, vector<31x32xf32> -> vector<32x32xf32>
    %42 = vector.extract_strided_slice %10 {offsets = [0, 0], sizes = [32, 1], strides = [1, 1]} : vector<32x3xf32> to vector<32x1xf32>
    %43 = vector.broadcast %42 : vector<32x1xf32> to vector<32x32xf32>
    %44 = arith.mulf %41, %43 : vector<32x32xf32>
    %45 = vector.extract_strided_slice %38 {offsets = [1, 0], sizes = [31, 32], strides = [1, 1]} : vector<32x32xf32> to vector<31x32xf32>
    %46 = vector.extract_strided_slice %38 {offsets = [0, 0], sizes = [1, 32], strides = [1, 1]} : vector<32x32xf32> to vector<1x32xf32>
    %47 = tpu.concatenate %45, %46 in 0 : vector<31x32xf32>, vector<1x32xf32> -> vector<32x32xf32>
    %48 = vector.extract_strided_slice %10 {offsets = [0, 2], sizes = [32, 1], strides = [1, 1]} : vector<32x3xf32> to vector<32x1xf32>
    %49 = vector.broadcast %48 : vector<32x1xf32> to vector<32x32xf32>
    %50 = arith.mulf %47, %49 : vector<32x32xf32>
    %51 = tpu.concatenate %44, %38, %50 in 1 : vector<32x32xf32>, vector<32x32xf32>, vector<32x32xf32> -> vector<32x96xf32>
    %c0_18 = arith.constant 0 : index
    %c0_19 = arith.constant 0 : index
    %52 = vector.load %arg9[%c0_18, %c0_19] : memref<96x32xf32, #tpu.memory_space<vmem>>, vector<96x32xf32>
    %cst_20 = arith.constant dense<0.000000e+00> : vector<32x32xf32>
    %53 = tpu.matmul %51, %52, %cst_20 {dimension_numbers = #tpu.dot_dimension_numbers<[1], [0], [0], [1], [0, 0, 1, 1], [], []>} : vector<32x96xf32>, vector<96x32xf32>, vector<32x32xf32> -> vector<32x32xf32>
    %c0_21 = arith.constant 0 : index
    %c0_22 = arith.constant 0 : index
    %54 = vector.load %arg10[%c0_21, %c0_22] : memref<1x32xf32, #tpu.memory_space<vmem>>, vector<1x32xf32>
    %55 = vector.broadcast %54 : vector<1x32xf32> to vector<32x32xf32>
    %56 = arith.addf %53, %55 : vector<32x32xf32>
    %cst_23 = arith.constant 0.000000e+00 : f32
    %57 = vector.broadcast %cst_23 : f32 to vector<32x32xf32>
    %58 = arith.maximumf %56, %57 : vector<32x32xf32>
    %c0_24 = arith.constant 0 : index
    %c0_25 = arith.constant 0 : index
    %59 = vector.load %arg11[%c0_24, %c0_25] : memref<1x32xf32, #tpu.memory_space<vmem>>, vector<1x32xf32>
    %60 = vector.broadcast %59 : vector<1x32xf32> to vector<32x32xf32>
    %61 = arith.mulf %58, %60 : vector<32x32xf32>
    %c0_26 = arith.constant 0 : index
    %c0_27 = arith.constant 0 : index
    %62 = vector.load %arg12[%c0_26, %c0_27] : memref<1x32xf32, #tpu.memory_space<vmem>>, vector<1x32xf32>
    %63 = vector.broadcast %62 : vector<1x32xf32> to vector<32x32xf32>
    %64 = arith.addf %61, %63 : vector<32x32xf32>
    %cst_28 = arith.constant 0.000000e+00 : f32
    %65 = vector.broadcast %cst_28 : f32 to vector<32x32xf32>
    %66 = arith.maximumf %64, %65 : vector<32x32xf32>
    %67 = vector.extract_strided_slice %66 {offsets = [31, 0], sizes = [1, 32], strides = [1, 1]} : vector<32x32xf32> to vector<1x32xf32>
    %68 = vector.extract_strided_slice %66 {offsets = [0, 0], sizes = [31, 32], strides = [1, 1]} : vector<32x32xf32> to vector<31x32xf32>
    %69 = tpu.concatenate %67, %68 in 0 : vector<1x32xf32>, vector<31x32xf32> -> vector<32x32xf32>
    %70 = vector.extract_strided_slice %10 {offsets = [0, 0], sizes = [32, 1], strides = [1, 1]} : vector<32x3xf32> to vector<32x1xf32>
    %71 = vector.broadcast %70 : vector<32x1xf32> to vector<32x32xf32>
    %72 = arith.mulf %69, %71 : vector<32x32xf32>
    %73 = vector.extract_strided_slice %66 {offsets = [1, 0], sizes = [31, 32], strides = [1, 1]} : vector<32x32xf32> to vector<31x32xf32>
    %74 = vector.extract_strided_slice %66 {offsets = [0, 0], sizes = [1, 32], strides = [1, 1]} : vector<32x32xf32> to vector<1x32xf32>
    %75 = tpu.concatenate %73, %74 in 0 : vector<31x32xf32>, vector<1x32xf32> -> vector<32x32xf32>
    %76 = vector.extract_strided_slice %10 {offsets = [0, 2], sizes = [32, 1], strides = [1, 1]} : vector<32x3xf32> to vector<32x1xf32>
    %77 = vector.broadcast %76 : vector<32x1xf32> to vector<32x32xf32>
    %78 = arith.mulf %75, %77 : vector<32x32xf32>
    %79 = tpu.concatenate %72, %66, %78 in 1 : vector<32x32xf32>, vector<32x32xf32>, vector<32x32xf32> -> vector<32x96xf32>
    %c0_29 = arith.constant 0 : index
    %c0_30 = arith.constant 0 : index
    %80 = vector.load %arg9[%c0_29, %c0_30] : memref<96x32xf32, #tpu.memory_space<vmem>>, vector<96x32xf32>
    %cst_31 = arith.constant dense<0.000000e+00> : vector<32x32xf32>
    %81 = tpu.matmul %79, %80, %cst_31 {dimension_numbers = #tpu.dot_dimension_numbers<[1], [0], [0], [1], [0, 0, 1, 1], [], []>} : vector<32x96xf32>, vector<96x32xf32>, vector<32x32xf32> -> vector<32x32xf32>
    %c0_32 = arith.constant 0 : index
    %c0_33 = arith.constant 0 : index
    %82 = vector.load %arg10[%c0_32, %c0_33] : memref<1x32xf32, #tpu.memory_space<vmem>>, vector<1x32xf32>
    %83 = vector.broadcast %82 : vector<1x32xf32> to vector<32x32xf32>
    %84 = arith.addf %81, %83 : vector<32x32xf32>
    %cst_34 = arith.constant 0.000000e+00 : f32
    %85 = vector.broadcast %cst_34 : f32 to vector<32x32xf32>
    %86 = arith.maximumf %84, %85 : vector<32x32xf32>
    %c0_35 = arith.constant 0 : index
    %c0_36 = arith.constant 0 : index
    %87 = vector.load %arg11[%c0_35, %c0_36] : memref<1x32xf32, #tpu.memory_space<vmem>>, vector<1x32xf32>
    %88 = vector.broadcast %87 : vector<1x32xf32> to vector<32x32xf32>
    %89 = arith.mulf %86, %88 : vector<32x32xf32>
    %c0_37 = arith.constant 0 : index
    %c0_38 = arith.constant 0 : index
    %90 = vector.load %arg12[%c0_37, %c0_38] : memref<1x32xf32, #tpu.memory_space<vmem>>, vector<1x32xf32>
    %91 = vector.broadcast %90 : vector<1x32xf32> to vector<32x32xf32>
    %92 = arith.addf %89, %91 : vector<32x32xf32>
    %cst_39 = arith.constant 0.000000e+00 : f32
    %93 = vector.broadcast %cst_39 : f32 to vector<32x32xf32>
    %94 = arith.maximumf %92, %93 : vector<32x32xf32>
    %95 = vector.extract_strided_slice %94 {offsets = [0, 0], sizes = [16, 32], strides = [1, 1]} : vector<32x32xf32> to vector<16x32xf32>
    %cst_40 = arith.constant dense<0xFF800000> : vector<32xf32>
    %96 = vector.multi_reduction <maximumf>, %95, %cst_40 [0] : vector<16x32xf32> to vector<32xf32>
    %97 = vector.shape_cast %96 : vector<32xf32> to vector<1x32xf32>
    %98 = vector.extract_strided_slice %94 {offsets = [16, 0], sizes = [16, 32], strides = [1, 1]} : vector<32x32xf32> to vector<16x32xf32>
    %cst_41 = arith.constant dense<0xFF800000> : vector<32xf32>
    %99 = vector.multi_reduction <maximumf>, %98, %cst_41 [0] : vector<16x32xf32> to vector<32xf32>
    %100 = vector.shape_cast %99 : vector<32xf32> to vector<1x32xf32>
    %101 = tpu.concatenate %97, %100 in 0 : vector<1x32xf32>, vector<1x32xf32> -> vector<2x32xf32>
    %c0_42 = arith.constant 0 : index
    %c0_43 = arith.constant 0 : index
    %102 = vector.load %arg13[%c0_42, %c0_43] : memref<32x24xf32, #tpu.memory_space<vmem>>, vector<32x24xf32>
    %cst_44 = arith.constant dense<0.000000e+00> : vector<2x24xf32>
    %103 = tpu.matmul %101, %102, %cst_44 {dimension_numbers = #tpu.dot_dimension_numbers<[1], [0], [0], [1], [0, 0, 1, 1], [], []>} : vector<2x32xf32>, vector<32x24xf32>, vector<2x24xf32> -> vector<2x24xf32>
    %c0_45 = arith.constant 0 : index
    %c0_46 = arith.constant 0 : index
    %104 = vector.load %arg14[%c0_45, %c0_46] : memref<1x24xf32, #tpu.memory_space<vmem>>, vector<1x24xf32>
    %105 = vector.broadcast %104 : vector<1x24xf32> to vector<2x24xf32>
    %106 = arith.addf %103, %105 : vector<2x24xf32>
    %c0_47 = arith.constant 0 : index
    %c0_48 = arith.constant 0 : index
    %107 = vector.load %arg15[%c0_47, %c0_48] : memref<2x24xf32, #tpu.memory_space<vmem>>, vector<2x24xf32>
    tpu.vector_store %arg15[%c0_47, %c0_48], %106 {strides = array<i32>} : memref<2x24xf32, #tpu.memory_space<vmem>>, vector<2x24xf32>,
    return
  }
  func.func @transform_0(%arg0: i32) -> (i32, i32) {
    %c0_i32 = arith.constant 0 : i32
    %c0_i32_0 = arith.constant 0 : i32
    %c0_i32_1 = arith.constant 0 : i32
    return %c0_i32, %c0_i32_0 : i32, i32
  }
  func.func @transform_1(%arg0: i32) -> (i32, i32) {
    %c0_i32 = arith.constant 0 : i32
    %c0_i32_0 = arith.constant 0 : i32
    %c0_i32_1 = arith.constant 0 : i32
    return %c0_i32, %c0_i32_0 : i32, i32
  }
  func.func @transform_2(%arg0: i32) -> (i32, i32) {
    %c0_i32 = arith.constant 0 : i32
    %c0_i32_0 = arith.constant 0 : i32
    %c0_i32_1 = arith.constant 0 : i32
    return %c0_i32, %c0_i32_0 : i32, i32
  }
  func.func @transform_3(%arg0: i32) -> (i32, i32) {
    %c0_i32 = arith.constant 0 : i32
    %c0_i32_0 = arith.constant 0 : i32
    %c0_i32_1 = arith.constant 0 : i32
    return %c0_i32, %c0_i32_0 : i32, i32
  }
  func.func @transform_4(%arg0: i32) -> (i32, i32) {
    %c0_i32 = arith.constant 0 : i32
    %c0_i32_0 = arith.constant 0 : i32
    %c0_i32_1 = arith.constant 0 : i32
    return %c0_i32, %c0_i32_0 : i32, i32
  }
  func.func @transform_5(%arg0: i32) -> (i32, i32) {
    %c0_i32 = arith.constant 0 : i32
    %c0_i32_0 = arith.constant 0 : i32
    %c0_i32_1 = arith.constant 0 : i32
    return %c0_i32, %c0_i32_0 : i32, i32
  }
  func.func @transform_6(%arg0: i32) -> (i32, i32) {
    %c0_i32 = arith.constant 0 : i32
    %c0_i32_0 = arith.constant 0 : i32
    %c0_i32_1 = arith.constant 0 : i32
    return %c0_i32, %c0_i32_0 : i32, i32
  }
  func.func @transform_7(%arg0: i32) -> (i32, i32) {
    %c0_i32 = arith.constant 0 : i32
    %c0_i32_0 = arith.constant 0 : i32
    %c0_i32_1 = arith.constant 0 : i32
    return %c0_i32, %c0_i32_0 : i32, i32
  }
  func.func @transform_8(%arg0: i32) -> (i32, i32) {
    %c0_i32 = arith.constant 0 : i32
    %c0_i32_0 = arith.constant 0 : i32
    %c0_i32_1 = arith.constant 0 : i32
    return %c0_i32, %c0_i32_0 : i32, i32
  }
  func.func @transform_9(%arg0: i32) -> (i32, i32) {
    %c0_i32 = arith.constant 0 : i32
    %c0_i32_0 = arith.constant 0 : i32
    %c0_i32_1 = arith.constant 0 : i32
    return %c0_i32, %c0_i32_0 : i32, i32
  }
  func.func @transform_10(%arg0: i32) -> (i32, i32) {
    %c0_i32 = arith.constant 0 : i32
    %c0_i32_0 = arith.constant 0 : i32
    %c0_i32_1 = arith.constant 0 : i32
    return %c0_i32, %c0_i32_0 : i32, i32
  }
  func.func @transform_11(%arg0: i32) -> (i32, i32) {
    %c0_i32 = arith.constant 0 : i32
    %c0_i32_0 = arith.constant 0 : i32
    %c0_i32_1 = arith.constant 0 : i32
    return %c0_i32, %c0_i32_0 : i32, i32
  }
  func.func @transform_12(%arg0: i32) -> (i32, i32) {
    %c0_i32 = arith.constant 0 : i32
    %c0_i32_0 = arith.constant 0 : i32
    %c0_i32_1 = arith.constant 0 : i32
    return %c0_i32, %c0_i32_0 : i32, i32
  }
  func.func @transform_13(%arg0: i32) -> (i32, i32) {
    %c0_i32 = arith.constant 0 : i32
    %c0_i32_0 = arith.constant 0 : i32
    %c0_i32_1 = arith.constant 0 : i32
    return %c0_i32, %c0_i32_0 : i32, i32
  }
  func.func @transform_14(%arg0: i32) -> (i32, i32) {
    %c0_i32 = arith.constant 0 : i32
    %c0_i32_0 = arith.constant 0 : i32
    %c0_i32_1 = arith.constant 0 : i32
    return %c0_i32, %c0_i32_0 : i32, i32
  }
}

</mosaic_0001>

<bundles_post_ra>
// kernel: tpu_custom_call.1
= control target key start
LH: loop header
LB: loop body
LE: loop exit
PB: predicated region body
PF: predicated region fallthrough
CT: control target
= control target key end

     0   :  { %v1275_v2 = vmov 0   ;;  %s1670_s0 = inlined_call_operand.vmem [shape: s32[32,1], index: 0, kind: input, shape index: {}]   ;;  %s1671_s1 = inlined_call_operand.vmem [shape: f32[40,16], index: 1, kind: input, shape index: {}]   ;;  %s1672_s2 = inlined_call_operand.vmem [shape: f32[32,16], index: 2, kind: input, shape index: {}]   ;;  %s1673_s3 = inlined_call_operand.vmem [shape: f32[32,3], index: 3, kind: input, shape index: {}]   ;;  %s1674_s4 = inlined_call_operand.vmem [shape: f32[48,32], index: 4, kind: input, shape index: {}]   ;;  %s1675_s5 = inlined_call_operand.vmem [shape: f32[1,32], index: 5, kind: input, shape index: {}]   ;;  %s1676_s6 = inlined_call_operand.vmem [shape: f32[1,32], index: 6, kind: input, shape index: {}]   ;;  %s1677_s7 = inlined_call_operand.vmem [shape: f32[1,32], index: 7, kind: input, shape index: {}]   ;;  %s1678_s8 = inlined_call_operand.vmem [shape: f32[96,32], index: 8, kind: input, shape index: {}]   ;;  %s1679_s9 = inlined_call_operand.vmem [shape: f32[1,32], index: 9, kind: input, shape index: {}]   ;;  %s1680_s10 = inlined_call_operand.vmem [shape: f32[1,32], index: 10, kind: input, shape index: {}]   ;;  %s1681_s11 = inlined_call_operand.vmem [shape: f32[1,32], index: 11, kind: input, shape index: {}]   ;;  %s1682_s12 = inlined_call_operand.vmem [shape: f32[32,24], index: 12, kind: input, shape index: {}]   ;;  %s1683_s13 = inlined_call_operand.vmem [shape: f32[1,24], index: 13, kind: input, shape index: {}]   ;;  %s1684_s14 = inlined_call_operand.hbm [shape: f32[2,24], index: 14, kind: output, shape index: {}]  }
   0x1   :  { %v50_v0 = vld [vmem:[%s1670_s0 + $0x10] sm:$0xff]  ;;  %v48_v1 = vld [vmem:[%s1670_s0] sm:$0xff]  ;;  %1245 = vset.pattern.permute.xlu1 %v1275_v2  ;;  %1244 = vset.pattern.permute.xlu0 %v1275_v2  ;;  %v79_v4 = vld [vmem:[%s1671_s1 + $0x8] sm:$0xff] }
   0x2   :  { %v78_v3 = vld [vmem:[%s1671_s1] sm:$0xff]  ;;  %61 = vperm.xlu1 %1245, %v50_v0   ;;  %55 = vperm.xlu0 %1244, %v48_v1   ;;  %v80_v6 = vld [vmem:[%s1671_s1 + $0x10] sm:$0xff]  ;;  %v81_v7 = vld [vmem:[%s1671_s1 + $0x18] sm:$0xff] }
   0x3   :  { %v1161_v5 = vpack.c.bf16 %v79_v4, %v78_v3 }
   0x4   :  { %19 = vsyncpa [#allocation3], 0  ;;  %v51_v8 = vld [vmem:[%s1670_s0 + $0x18] sm:$0xff]  ;;  %v49_v9 = vld [vmem:[%s1670_s0 + $0x8] sm:$0xff]  ;;  %v1165_v10 = vpack.c.bf16 %v81_v7, %v80_v6  ;;  %v1276_v14 = vmov 2   ;;  %v52_v17 = vlaneseq  ;;  %vm87_vm0 = vcmask 326656  }
   0x5   :  { %1162 = vmatprep.subr.bf16.mxu0 %v1161_v5  ;;  %v82_v11 = vld [vmem:[%s1671_s1 + $0x20] sm:$0xff]  ;;  %v186_v12 = vld [vmem:[%s1673_s3 + $0x8] sm:$0xff]  ;;  %v187_v15 = vld [vmem:[%s1673_s3 + $0x10] sm:$0xff]  ;;  %v1277_v21 = vmov 0.0   ;;  %vm195_vm5 = vcmask 1040384   ;;  %vm231_vm6 = vcmask 1046528  }
   0x6   :  { %1164 = vmatpush3.bf16.msra.mxu0 %v1161_v5  ;;  %64 = vperm.xlu1 %1245, %v51_v8   ;;  %v185_v13 = vld [vmem:[%s1673_s3] sm:$0xff]  ;;  %v188_v16 = vld [vmem:[%s1673_s3 + $0x18] sm:$0xff]  ;;  %v53_v18 = vand.u32 127, %v52_v17  ;;  %v304_v29 = vld [vmem:[%s1674_s4 + $0x8] sm:$0xff]  ;;  %vm293_vm7 = vcmask 130048   ;;  %vm298_vm8 = vcmask 261120  }
   0x7   :  { %58 = vperm.xlu0 %1244, %v49_v9   ;;  %1166 = vmatprep.subr.bf16.mxu0 %v1165_v10  ;;  %v303_v28 = vld [vmem:[%s1674_s4] sm:$0xff]  ;;  %v305_v31 = vld [vmem:[%s1674_s4 + $0x10] sm:$0xff]  ;;  %v306_v32 = vld [vmem:[%s1674_s4 + $0x18] sm:$0xff]  ;;  %vm316_vm9 = vcmask 392192   ;;  %vm514_vm10 = vcmask 523264   ;;  %vm538_vm11 = vcmask 785408  }
   0x8   :  { %v1169_v30 = vpack.c.bf16 %v304_v29, %v303_v28  ;;  %v1173_v33 = vpack.c.bf16 %v306_v32, %v305_v31  ;;  %v307_v34 = vld [vmem:[%s1674_s4 + $0x20] sm:$0xff]  ;;  %v308_v35 = vld [vmem:[%s1674_s4 + $0x28] sm:$0xff]  ;;  %v86_v43 = vld [vmem:[%s1672_s2 + $0x18] sm:$0xff]  ;;  %s1278_s4 = smov 16   ;;  %vm1282_vm12 = vmmov 0   ;;  %s1283_s20 = smov [#allocation2]  }
   0x9   :  { %v1177_v36 = vpack.c.bf16 %v308_v35, %v307_v34  ;;  %v84_v37 = vld [vmem:[%s1672_s2 + $0x8] sm:$0xff]  ;;  %v83_v38 = vld [vmem:[%s1672_s2] sm:$0xff]  ;;  %v85_v46 = vld [vmem:[%s1672_s2 + $0x10] sm:$0xff]  ;;  %s1279_s2 = smov 32   ;;  %s964_s3 = sshll.u32 %s1283_s20, 4  ;;  %vm956_vm13 = vcmask 189440   ;;  %s965_s3 = int_to_ptr.vmem [resolvable:$true] %s964_s3 }
   0xa   :  { %1168 = vmatpush3.bf16.msra.mxu0 %v1165_v10  ;;  %1247 = vset.pattern.permute.xlu1 %v1276_v14  ;;  %v519_v34 = vld [vmem:[%s1678_s8] sm:$0xff]  ;;  %v520_v35 = vld [vmem:[%s1678_s8 + $0x8] sm:$0xff]  ;;  %s1251_s21 = scalar_lea.vmem %s965_s3, 32  ;;  %p1256_p1 = scmp.lt.s32.totalorder %s965_s3, %s965_s3 }
   0xb   :  { %1064 = vmatprep.subr.mxu0 %v82_v11  ;;  %250 = vperm.xlu1 %1247, %v186_v12   ;;  %p1252_p0 = scmp.ne.s32.totalorder %s965_s3, %s1251_s21  ;;  %p1257_p2 = scmp.lt.s32.totalorder %s1251_s21, %s1251_s21 }
   0xc   :  { %1246 = vset.pattern.permute.xlu0 %v1276_v14  ;;  %1170 = vmatprep.subr.bf16.mxu1 %v1169_v30 }
   0xd   :  { %246 = vperm.xlu0 %1246, %v185_v13   ;;  %1172 = vmatpush3.bf16.msra.mxu1 %v1169_v30  ;;  %p1258_p3 = por %p1257_p2, %p1256_p1 }
   0xe   :  { %1065 = vmatpush3.msra.mxu0 %v82_v11  ;;  %1174 = vmatprep.subr.bf16.mxu1 %v1173_v33 }
   0xf   :  { %254 = vperm.xlu1 %1247, %v187_v15   ;;  %p1259_p4 = pnand %p1258_p3, %p1252_p0 }
  0x11   :  { %258 = vperm.xlu0 %1246, %v188_v16   ;;  %1176 = vmatpush3.bf16.msra.mxu1 %v1173_v33 }
  0x12   :  { %1178 = vmatprep.subr.bf16.mxu1 %v1177_v36 }
  0x13   :  { %1248 = vset.pattern.permute.xlu1 %v1275_v2 }
  0x14   :  { %209 = vperm.xlu1 %1248, %v185_v13  }
  0x15   :  { %1249 = vset.pattern.permute.xlu0 %v1275_v2  ;;  %1180 = vmatpush3.bf16.msra.mxu1 %v1177_v36  ;;  %v521_v36 = vld [vmem:[%s1678_s8 + $0x10] sm:$0xff] }
  0x16   :  { %214 = vperm.xlu0 %1249, %v186_v12  }
  0x18   :  { %219 = vperm.xlu1 %1248, %v187_v15  }
  0x1a   :  { %1250 = vset.pattern.permute.xlu0 %v1276_v14 }
  0x1c   :  { %224 = vperm.xlu1 %1248, %v188_v16  }
  0x81   :  { %v62_v19 = vpop.permute.xlu1 %61  ;;  %v56_v20 = vpop.permute.xlu0 %55 }
  0x82   :  { %vm66_vm1 = vcmp.eq.s32.totalorder %v53_v18, %v56_v20  ;;  %vm68_vm2 = vcmp.eq.s32.totalorder %v53_v18, %v62_v19 }
  0x83   :  { %v972_v22 = vsel %vm66_vm1, 1.0, %v1277_v21  ;;  %v974_v25 = vsel %vm68_vm2, 1.0, %v1277_v21 }
  0x84   :  { %1066 = vmatprep.mubr.msk.f32.mxu0 %vm87_vm0, %v972_v22 }
  0x85   :  { %v65_v23 = vpop.permute.xlu1 %64 }
  0x86   :  { %v59_v24 = vpop.permute.xlu0 %58  ;;  %vm69_vm4 = vcmp.eq.s32.totalorder %v53_v18, %v65_v23 }
  0x87   :  { %vm67_vm3 = vcmp.eq.s32.totalorder %v53_v18, %v59_v24  ;;  %v975_v27 = vsel %vm69_vm4, 1.0, %v1277_v21 }
  0x88   :  { %v973_v26 = vsel %vm67_vm3, 1.0, %v1277_v21 }
  0x89   :  { %1067 = vmatmul.mubr.msk.f32.vlgmr.msra.gmra.mrb[0].mxu0 %vm87_vm0, %v973_v26 }
  0x8a   :  { %1069 = vmatprep.mubr.msk.f32.mxu0 %vm87_vm0, %v974_v25  ;;  %v1434_v55 = vpop.permute.xlu1 %250 }
  0x8c   :  { %v1436_v58 = vpop.permute.xlu0 %246 }
  0x8d   :  { %1070 = vmatmul.mubr.msk.f32.gmra.mrb[2].mxu0 %vm87_vm0, %v975_v27 }
  0x8e   :  { %v1447_v5 = vpop.permute.xlu1 %254 }
  0x90   :  { %v1450_v6 = vpop.permute.xlu0 %258 }
  0x93   :  { %v1456_v9 = vpop.permute.xlu1 %209 }
  0x95   :  { %v1462_v12 = vpop.permute.xlu0 %214 }
  0x97   :  { %v1458_v10 = vpop.permute.xlu1 %219 }
  0x9b   :  { %v1460_v11 = vpop.permute.xlu1 %224 }
 0x15c   :  { %v1068_v39 = vpop.f32.mrb[0].mxu0 }
 0x15d   :  { %v172_v40 = vadd.f32 %v1068_v39, %v84_v37  ;;  %v166_v41 = vpop.f32.mrb[1].mxu0  ;;  %v1181_v37 = vpack.c.bf16 %v520_v35, %v519_v34 }
 0x15e   :  { %v167_v42 = vadd.f32 %v166_v41, %v83_v38  ;;  %v522_v38 = vld [vmem:[%s1678_s8 + $0x18] sm:$0xff]  ;;  %v524_v41 = vld [vmem:[%s1678_s8 + $0x28] sm:$0xff] }
 0x15f   :  { %v197_v44 = vrot.slane %v172_v40, 7  ;;  %v233_v45 = vrot.slane %v172_v40, 1  ;;  %267 = vrot.lane.b32.xlu1 %v172_v40, %s1278_s4  ;;  %v1185_v39 = vpack.c.bf16 %v522_v38, %v521_v36  ;;  %v523_v40 = vld [vmem:[%s1678_s8 + $0x20] sm:$0xff]  ;;  %1182 = vmatprep.subr.bf16.mxu0 %v1181_v37 }
 0x160   :  { %v196_v47 = vrot.slane %v167_v42, 7  ;;  %v232_v48 = vrot.slane %v167_v42, 1  ;;  %v1071_v49 = vpop.f32.mrb[2].mxu0  ;;  %265 = vrot.lane.b32.xlu0 %v167_v42, %s1278_s4  ;;  %1206 = vmatprep.subr.bf16.mxu1 %v1181_v37  ;;  %v1189_v42 = vpack.c.bf16 %v524_v41, %v523_v40 }
 0x161   :  { %v182_v50 = vadd.f32 %v1071_v49, %v86_v43  ;;  %v176_v51 = vpop.f32.mrb[3].mxu0  ;;  %1184 = vmatpush3.bf16.msra.mxu0 %v1181_v37  ;;  %v525_v43 = vld [vmem:[%s1678_s8 + $0x30] sm:$0xff] }
 0x162   :  { %v177_v52 = vadd.f32 %v176_v51, %v85_v46  ;;  %v198_v53 = vsel %vm195_vm5, %v196_v47, %v197_v44  ;;  %v234_v54 = vsel %vm231_vm6, %v232_v48, %v233_v45  ;;  %1186 = vmatprep.subr.bf16.mxu0 %v1185_v39  ;;  %v980_v46 = vld [vmem:[%s1675_s5] ss:$0 sm:$0xff] }
 0x163   :  { %v190_v56 = vrot.slane %v182_v50, 7  ;;  %v237_v57 = vrot.slane %v182_v50, 1  ;;  %271 = vrot.lane.b32.xlu1 %v182_v50, %s1278_s4  ;;  %v261_v61 = vmul.f32 %v1436_v58, %v234_v54  ;;  %v228_v18 = vmul.f32 %v1462_v12, %v198_v53  ;;  %v985_v53 = vld [vmem:[%s1676_s6] ss:$0 sm:$0xff]  ;;  %s1280_s6 = smov 64  }
 0x164   :  { %v199_v59 = vrot.slane %v177_v52, 7  ;;  %v235_v60 = vrot.slane %v177_v52, 1  ;;  %269 = vrot.lane.b32.xlu0 %v177_v52, %s1278_s4 }
 0x165   :  { %v244_v62 = vsel %vm231_vm6, %v237_v57, %v232_v48  ;;  %v206_v63 = vsel %vm195_vm5, %v190_v56, %v196_v47  ;;  %1188 = vmatpush3.bf16.msra.mxu0 %v1185_v39  ;;  %v527_v47 = vld [vmem:[%s1678_s8 + $0x40] sm:$0xff]  ;;  %v528_v48 = vld [vmem:[%s1678_s8 + $0x48] sm:$0xff] }
 0x166   :  { %v200_v0 = vsel %vm195_vm5, %v197_v44, %v199_v59  ;;  %v201_v1 = vsel %vm195_vm5, %v199_v59, %v190_v56  ;;  %v236_v2 = vsel %vm231_vm6, %v233_v45, %v235_v60  ;;  %v238_v3 = vsel %vm231_vm6, %v235_v60, %v237_v57  ;;  %v526_v44 = vld [vmem:[%s1678_s8 + $0x38] sm:$0xff]  ;;  %1190 = vmatprep.subr.bf16.mxu0 %v1189_v42  ;;  %v529_v57 = vld [vmem:[%s1678_s8 + $0x50] sm:$0xff] }
 0x167   :  { %v262_v4 = vmul.f32 %v1434_v55, %v236_v2  ;;  %v263_v7 = vmul.f32 %v1447_v5, %v238_v3  ;;  %v264_v8 = vmul.f32 %v1450_v6, %v244_v62  ;;  %v227_v17 = vmul.f32 %v1456_v9, %v206_v63  ;;  %v530_v59 = vld [vmem:[%s1678_s8 + $0x58] sm:$0xff]  ;;  %v986_v62 = vld [vmem:[%s1677_s7] ss:$0 sm:$0xff] }
 0x168   :  { %281 = vrot.lane.b32.xlu0 %v261_v61, %s1279_s2  ;;  %v229_v25 = vmul.f32 %v1458_v10, %v200_v0  ;;  %v230_v27 = vmul.f32 %v1460_v11, %v201_v1  ;;  %v1193_v45 = vpack.c.bf16 %v526_v44, %v525_v43  ;;  %v1197_v50 = vpack.c.bf16 %v528_v48, %v527_v47 }
 0x169   :  { %283 = vrot.lane.b32.xlu1 %v262_v4, %s1279_s2  ;;  %1192 = vmatpush3.bf16.msra.mxu0 %v1189_v42  ;;  %v1201_v63 = vpack.c.bf16 %v530_v59, %v529_v57 }
 0x16a   :  { %1194 = vmatprep.subr.bf16.mxu0 %v1193_v45 }
 0x16c   :  { %285 = vrot.lane.b32.xlu0 %v263_v7, %s1279_s2 }
 0x16d   :  { %287 = vrot.lane.b32.xlu1 %v264_v8, %s1279_s2  ;;  %1196 = vmatpush3.bf16.msra.mxu0 %v1193_v45 }
 0x16e   :  { %1198 = vmatprep.subr.bf16.mxu0 %v1197_v50 }
 0x171   :  { %1200 = vmatpush3.bf16.msra.mxu0 %v1197_v50 }
 0x172   :  { %1202 = vmatprep.subr.bf16.mxu0 %v1201_v63 }
 0x175   :  { %1204 = vmatpush3.bf16.msra.mxu0 %v1201_v63 }
 0x1d1   :  { %v268_v13 = vpop.permute.xlu1 %267 }
 0x1d2   :  { %v266_v14 = vpop.permute.xlu0 %265  ;;  %v295_v22 = vsel %vm293_vm7, %v228_v18, %v268_v13 }
 0x1d3   :  { %v294_v19 = vsel %vm293_vm7, %v227_v17, %v266_v14 }
 0x1d5   :  { %v272_v16 = vpop.permute.xlu1 %271 }
 0x1d6   :  { %v270_v15 = vpop.permute.xlu0 %269  ;;  %v297_v30 = vsel %vm293_vm7, %v230_v27, %v272_v16 }
 0x1d7   :  { %v296_v28 = vsel %vm293_vm7, %v229_v25, %v270_v15 }
 0x1da   :  { %v282_v20 = vpop.permute.xlu0 %281 }
 0x1db   :  { %v284_v23 = vpop.permute.xlu1 %283  ;;  %v299_v24 = vsel %vm298_vm8, %v294_v19, %v282_v20 }
 0x1dc   :  { %v300_v26 = vsel %vm298_vm8, %v295_v22, %v284_v23  ;;  %1084 = vmatprep.mubr.msk.f32.mxu1 %vm316_vm9, %v299_v24 }
 0x1dd   :  { %1085 = vmatmul.mubr.msk.f32.vlgmr.msra.gmra.mrb[0].mxu1 %vm316_vm9, %v300_v26 }
 0x1de   :  { %v286_v29 = vpop.permute.xlu0 %285  ;;  %1208 = vmatpush3.bf16.msra.mxu1 %v1181_v37 }
 0x1df   :  { %v301_v31 = vsel %vm298_vm8, %v296_v28, %v286_v29  ;;  %v288_v32 = vpop.permute.xlu1 %287  ;;  %1210 = vmatprep.subr.bf16.mxu1 %v1185_v39 }
 0x1e0   :  { %v302_v33 = vsel %vm298_vm8, %v297_v30, %v288_v32  ;;  %1087 = vmatprep.mubr.msk.f32.mxu1 %vm316_vm9, %v301_v31 }
 0x1e1   :  { %1088 = vmatmul.mubr.msk.f32.gmra.mrb[2].mxu1 %vm316_vm9, %v302_v33 }
 0x1e2   :  { %1212 = vmatpush3.bf16.msra.mxu1 %v1185_v39 }
 0x1e3   :  { %1214 = vmatprep.subr.bf16.mxu1 %v1189_v42 }
 0x1e6   :  { %1216 = vmatpush3.bf16.msra.mxu1 %v1189_v42 }
 0x1e7   :  { %1218 = vmatprep.subr.bf16.mxu1 %v1193_v45 }
 0x1ea   :  { %1220 = vmatpush3.bf16.msra.mxu1 %v1193_v45 }
 0x1eb   :  { %1222 = vmatprep.subr.bf16.mxu1 %v1197_v50 }
 0x1ee   :  { %1224 = vmatpush3.bf16.msra.mxu1 %v1197_v50 }
 0x1ef   :  { %1226 = vmatprep.subr.bf16.mxu1 %v1201_v63 }
 0x1f2   :  { %1228 = vmatpush3.bf16.msra.mxu1 %v1201_v63 }
 0x2b0   :  { %v1086_v49 = vpop.f32.mrb[0].mxu1 }
 0x2b1   :  { %v401_v51 = vadd.f32 %v1086_v49, %v980_v46  ;;  %v395_v52 = vpop.f32.mrb[1].mxu1 }
 0x2b2   :  { %v396_v54 = vadd.f32 %v980_v46, %v395_v52 }
 0x2b3   :  { %v415_v56 = vmax.f32 %v401_v51, 0.0 }
 0x2b4   :  { %v414_v60 = vmax.f32 %v396_v54, 0.0  ;;  %v1089_v61 = vpop.f32.mrb[2].mxu1 }
 0x2b5   :  { %v426_v0 = vmul.f32 %v985_v53, %v415_v56  ;;  %v411_v1 = vadd.f32 %v1089_v61, %v980_v46  ;;  %v405_v2 = vpop.f32.mrb[3].mxu1 }
 0x2b6   :  { %v425_v3 = vmul.f32 %v985_v53, %v414_v60  ;;  %v406_v4 = vadd.f32 %v980_v46, %v405_v2  ;;  %v1564_v2 = vld [vmem:[%s1679_s9] ss:$0 sm:$0xff] }
 0x2b7   :  { %v417_v7 = vmax.f32 %v411_v1, 0.0  ;;  %v437_v8 = vadd.f32 %v986_v62, %v426_v0 }
 0x2b8   :  { %v416_v13 = vmax.f32 %v406_v4, 0.0  ;;  %v436_v14 = vadd.f32 %v986_v62, %v425_v3 }
 0x2b9   :  { %v428_v15 = vmul.f32 %v985_v53, %v417_v7  ;;  %v441_v16 = vmax.f32 %v437_v8, 0.0  ;;  %v1570_v8 = vld [vmem:[%s1680_s10] ss:$0 sm:$0xff] }
 0x2ba   :  { %v427_v17 = vmul.f32 %v985_v53, %v416_v13  ;;  %v440_v18 = vmax.f32 %v436_v14, 0.0 }
 0x2bb   :  { %484 = vrot.lane.b32.xlu1 %v441_v16, %s1279_s2  ;;  %v451_v19 = vrot.slane %v441_v16, 7  ;;  %v466_v20 = vrot.slane %v441_v16, 1  ;;  %v439_v22 = vadd.f32 %v986_v62, %v428_v15 }
 0x2bc   :  { %482 = vrot.lane.b32.xlu0 %v440_v18, %s1279_s2  ;;  %v450_v23 = vrot.slane %v440_v18, 7  ;;  %v465_v24 = vrot.slane %v440_v18, 1  ;;  %v438_v25 = vadd.f32 %v986_v62, %v427_v17  ;;  %v1576_v17 = vld [vmem:[%s1681_s11] ss:$0 sm:$0xff] }
 0x2bd   :  { %v443_v26 = vmax.f32 %v439_v22, 0.0 }
 0x2be   :  { %v442_v27 = vmax.f32 %v438_v25, 0.0  ;;  %v467_v28 = vsel %vm231_vm6, %v465_v24, %v466_v20  ;;  %v452_v29 = vsel %vm195_vm5, %v450_v23, %v451_v19 }
 0x2bf   :  { %488 = vrot.lane.b32.xlu1 %v443_v26, %s1279_s2  ;;  %v445_v30 = vrot.slane %v443_v26, 7  ;;  %v470_v31 = vrot.slane %v443_v26, 1  ;;  %v478_v36 = vmul.f32 %v467_v28, %v1436_v58  ;;  %v462_v49 = vmul.f32 %v452_v29, %v1462_v12 }
 0x2c0   :  { %486 = vrot.lane.b32.xlu0 %v442_v27, %s1279_s2  ;;  %v453_v32 = vrot.slane %v442_v27, 7  ;;  %v468_v33 = vrot.slane %v442_v27, 1 }
 0x2c1   :  { %v477_v34 = vsel %vm231_vm6, %v470_v31, %v465_v24  ;;  %v460_v35 = vsel %vm195_vm5, %v445_v30, %v450_v23 }
 0x2c2   :  { %v469_v37 = vsel %vm231_vm6, %v466_v20, %v468_v33  ;;  %v471_v38 = vsel %vm231_vm6, %v468_v33, %v470_v31  ;;  %v455_v40 = vsel %vm195_vm5, %v453_v32, %v445_v30  ;;  %v454_v41 = vsel %vm195_vm5, %v451_v19, %v453_v32 }
 0x2c3   :  { %v479_v39 = vmul.f32 %v469_v37, %v1434_v55  ;;  %v480_v42 = vmul.f32 %v471_v38, %v1447_v5  ;;  %v481_v43 = vmul.f32 %v477_v34, %v1450_v6  ;;  %v461_v48 = vmul.f32 %v460_v35, %v1456_v9 }
 0x2c4   :  { %498 = vrot.lane.b32.xlu0 %v478_v36, %s1280_s6  ;;  %v463_v56 = vmul.f32 %v454_v41, %v1458_v10  ;;  %v464_v59 = vmul.f32 %v455_v40, %v1460_v11 }
 0x2c5   :  { %500 = vrot.lane.b32.xlu1 %v479_v39, %s1280_s6 }
 0x2c8   :  { %502 = vrot.lane.b32.xlu0 %v480_v42, %s1280_s6 }
 0x2c9   :  { %504 = vrot.lane.b32.xlu1 %v481_v43, %s1280_s6 }
 0x32d   :  { %v485_v44 = vpop.permute.xlu1 %484 }
 0x32e   :  { %v483_v45 = vpop.permute.xlu0 %482  ;;  %v511_v52 = vsel %vm298_vm8, %v462_v49, %v485_v44 }
 0x32f   :  { %v510_v50 = vsel %vm298_vm8, %v461_v48, %v483_v45 }
 0x331   :  { %v489_v47 = vpop.permute.xlu1 %488 }
 0x332   :  { %v487_v46 = vpop.permute.xlu0 %486  ;;  %v513_v62 = vsel %vm298_vm8, %v464_v59, %v489_v47 }
 0x333   :  { %v512_v60 = vsel %vm298_vm8, %v463_v56, %v487_v46 }
 0x336   :  { %v499_v51 = vpop.permute.xlu0 %498 }
 0x337   :  { %v515_v53 = vsel %vm514_vm10, %v510_v50, %v499_v51  ;;  %v501_v54 = vpop.permute.xlu1 %500 }
 0x338   :  { %v516_v57 = vsel %vm514_vm10, %v511_v52, %v501_v54  ;;  %1114 = vmatprep.mubr.msk.f32.mxu0 %vm538_vm11, %v515_v53 }
 0x339   :  { %1115 = vmatmul.mubr.msk.f32.vlgmr.msra.gmra.mrb[4].mxu0 %vm538_vm11, %v516_v57 }
 0x33a   :  { %v503_v61 = vpop.permute.xlu0 %502 }
 0x33b   :  { %v517_v63 = vsel %vm514_vm10, %v512_v60, %v503_v61  ;;  %v505_v0 = vpop.permute.xlu1 %504 }
 0x33c   :  { %v518_v1 = vsel %vm514_vm10, %v513_v62, %v505_v0  ;;  %1117 = vmatprep.mubr.msk.f32.mxu0 %vm538_vm11, %v517_v63 }
 0x33d   :  { %1118 = vmatmul.mubr.msk.f32.gmra.mrb[6].mxu0 %vm538_vm11, %v518_v1 }
 0x33e   :  { %1158 = vmatprep.mubr.msk.f32.mxu0 %vm1282_vm12, %v1277_v21 }
 0x40c   :  { %v1116_v3 = vpop.f32.mrb[4].mxu0 }
 0x40d   :  { %v623_v4 = vadd.f32 %v1116_v3, %v1564_v2  ;;  %v617_v7 = vpop.f32.mrb[5].mxu0 }
 0x40e   :  { %v618_v13 = vadd.f32 %v1564_v2, %v617_v7 }
 0x40f   :  { %v637_v14 = vmax.f32 %v623_v4, 0.0 }
 0x410   :  { %v636_v15 = vmax.f32 %v618_v13, 0.0  ;;  %v1119_v16 = vpop.f32.mrb[6].mxu0 }
 0x411   :  { %v648_v18 = vmul.f32 %v1570_v8, %v637_v14  ;;  %v633_v19 = vadd.f32 %v1119_v16, %v1564_v2  ;;  %v627_v20 = vpop.f32.mrb[7].mxu0 }
 0x412   :  { %v647_v22 = vmul.f32 %v1570_v8, %v636_v15  ;;  %v628_v23 = vadd.f32 %v1564_v2, %v627_v20  ;;  %v875_v20 = vld [vmem:[%s1682_s12 + $0x18] sm:$0xff] }
 0x413   :  { %v639_v24 = vmax.f32 %v633_v19, 0.0  ;;  %v659_v25 = vadd.f32 %v1576_v17, %v648_v18  ;;  %v1281_v18 = vmov 0.0|0.0   ;;  %v874_v19 = vld [vmem:[%s1682_s12 + $0x10] sm:$0xff] }
 0x414   :  { %v638_v26 = vmax.f32 %v628_v23, 0.0  ;;  %v658_v27 = vadd.f32 %v1576_v17, %v647_v22  ;;  %1229 = vmatprep.subr.bf16.mxu0 %v1281_v18  ;;  %v1233_v22 = vpack.c.bf16 %v875_v20, %v874_v19 }
 0x415   :  { %v650_v28 = vmul.f32 %v1570_v8, %v639_v24  ;;  %v663_v29 = vmax.f32 %v659_v25, 0.0 }
 0x416   :  { %v649_v30 = vmul.f32 %v1570_v8, %v638_v26  ;;  %v662_v31 = vmax.f32 %v658_v27, 0.0 }
 0x417   :  { %706 = vrot.lane.b32.xlu1 %v663_v29, %s1279_s2  ;;  %v673_v32 = vrot.slane %v663_v29, 7  ;;  %v688_v33 = vrot.slane %v663_v29, 1  ;;  %v661_v34 = vadd.f32 %v1576_v17, %v650_v28 }
 0x418   :  { %704 = vrot.lane.b32.xlu0 %v662_v31, %s1279_s2  ;;  %v672_v35 = vrot.slane %v662_v31, 7  ;;  %v687_v36 = vrot.slane %v662_v31, 1  ;;  %v660_v37 = vadd.f32 %v1576_v17, %v649_v30 }
 0x419   :  { %v665_v38 = vmax.f32 %v661_v34, 0.0 }
 0x41a   :  { %v664_v39 = vmax.f32 %v660_v37, 0.0  ;;  %v689_v40 = vsel %vm231_vm6, %v687_v36, %v688_v33  ;;  %v674_v41 = vsel %vm195_vm5, %v672_v35, %v673_v32 }
 0x41b   :  { %710 = vrot.lane.b32.xlu1 %v665_v38, %s1279_s2  ;;  %v667_v42 = vrot.slane %v665_v38, 7  ;;  %v692_v43 = vrot.slane %v665_v38, 1  ;;  %v700_v48 = vmul.f32 %v689_v40, %v1436_v58  ;;  %v684_v61 = vmul.f32 %v674_v41, %v1462_v12 }
 0x41c   :  { %708 = vrot.lane.b32.xlu0 %v664_v39, %s1279_s2  ;;  %v675_v44 = vrot.slane %v664_v39, 7  ;;  %v690_v45 = vrot.slane %v664_v39, 1 }
 0x41d   :  { %v699_v46 = vsel %vm231_vm6, %v692_v43, %v687_v36  ;;  %v682_v47 = vsel %vm195_vm5, %v667_v42, %v672_v35 }
 0x41e   :  { %v691_v49 = vsel %vm231_vm6, %v688_v33, %v690_v45  ;;  %v693_v50 = vsel %vm231_vm6, %v690_v45, %v692_v43  ;;  %v677_v52 = vsel %vm195_vm5, %v675_v44, %v667_v42  ;;  %v676_v53 = vsel %vm195_vm5, %v673_v32, %v675_v44 }
 0x41f   :  { %v701_v51 = vmul.f32 %v691_v49, %v1434_v55  ;;  %v702_v54 = vmul.f32 %v693_v50, %v1447_v5  ;;  %v703_v56 = vmul.f32 %v699_v46, %v1450_v6  ;;  %v683_v60 = vmul.f32 %v682_v47, %v1456_v9 }
 0x420   :  { %720 = vrot.lane.b32.xlu0 %v700_v48, %s1280_s6  ;;  %v685_v1 = vmul.f32 %v676_v53, %v1458_v10  ;;  %v686_v4 = vmul.f32 %v677_v52, %v1460_v11  ;;  %v872_v10 = vld [vmem:[%s1682_s12] sm:$0xff]  ;;  %v873_v11 = vld [vmem:[%s1682_s12 + $0x8] sm:$0xff] }
 0x421   :  { %722 = vrot.lane.b32.xlu1 %v701_v51, %s1280_s6  ;;  %v1230_v16 = vpack.c.bf16 %v873_v11, %v872_v10 }
 0x423   :  { %1231 = vmatpush3.bf16.msra.mxu0 %v1230_v16 }
 0x424   :  { %724 = vrot.lane.b32.xlu0 %v702_v54, %s1280_s6  ;;  %1232 = vmatprep.subr.bf16.mxu0 %v1281_v18 }
 0x425   :  { %726 = vrot.lane.b32.xlu1 %v703_v56, %s1280_s6 }
 0x427   :  { %1234 = vmatpush3.bf16.msra.mxu0 %v1233_v22 }
 0x489   :  { %v707_v58 = vpop.permute.xlu1 %706 }
 0x48a   :  { %v705_v57 = vpop.permute.xlu0 %704  ;;  %v733_v0 = vsel %vm298_vm8, %v684_v61, %v707_v58 }
 0x48b   :  { %v732_v62 = vsel %vm298_vm8, %v683_v60, %v705_v57 }
 0x48d   :  { %v711_v55 = vpop.permute.xlu1 %710 }
 0x48e   :  { %v709_v59 = vpop.permute.xlu0 %708  ;;  %v735_v7 = vsel %vm298_vm8, %v686_v4, %v711_v55 }
 0x48f   :  { %v734_v9 = vsel %vm298_vm8, %v685_v1, %v709_v59 }
 0x492   :  { %v721_v63 = vpop.permute.xlu0 %720 }
 0x493   :  { %v736_v5 = vsel %vm514_vm10, %v732_v62, %v721_v63  ;;  %v723_v6 = vpop.permute.xlu1 %722  ;;  %v998_v62 = vld [vmem:[%s1683_s13] ss:$0 sm:$0xff] }
 0x494   :  { %v737_v3 = vsel %vm514_vm10, %v733_v0, %v723_v6  ;;  %1144 = vmatprep.mubr.msk.f32.mxu1 %vm538_vm11, %v736_v5 }
 0x495   :  { %1145 = vmatmul.mubr.msk.f32.vlgmr.msra.gmra.mrb[4].mxu1 %vm538_vm11, %v737_v3 }
 0x496   :  { %v725_v12 = vpop.permute.xlu0 %724 }
 0x497   :  { %v738_v13 = vsel %vm514_vm10, %v734_v9, %v725_v12  ;;  %v727_v14 = vpop.permute.xlu1 %726 }
 0x498   :  { %v739_v15 = vsel %vm514_vm10, %v735_v7, %v727_v14  ;;  %1147 = vmatprep.mubr.msk.f32.mxu1 %vm538_vm11, %v738_v13 }
 0x499   :  { %1148 = vmatmul.mubr.msk.f32.gmra.mrb[6].mxu1 %vm538_vm11, %v739_v15 }
 0x568   :  { %v1146_v23 = vpop.f32.mrb[4].mxu1 }
 0x569   :  { %v824_v24 = vadd.f32 %v1146_v23, %v1564_v2  ;;  %v818_v25 = vpop.f32.mrb[5].mxu1 }
 0x56a   :  { %v819_v26 = vadd.f32 %v1564_v2, %v818_v25 }
 0x56b   :  { %v838_v27 = vmax.f32 %v824_v24, 0.0 }
 0x56c   :  { %v837_v28 = vmax.f32 %v819_v26, 0.0  ;;  %v1149_v29 = vpop.f32.mrb[6].mxu1 }
 0x56d   :  { %v842_v30 = vmul.f32 %v1570_v8, %v838_v27  ;;  %v834_v31 = vadd.f32 %v1149_v29, %v1564_v2  ;;  %v828_v32 = vpop.f32.mrb[7].mxu1 }
 0x56e   :  { %v841_v33 = vmul.f32 %v1570_v8, %v837_v28  ;;  %v829_v34 = vadd.f32 %v1564_v2, %v828_v32 }
 0x56f   :  { %v846_v21 = vadd.f32 %v1576_v17, %v842_v30  ;;  %v840_v35 = vmax.f32 %v834_v31, 0.0 }
 0x570   :  { %v845_v36 = vadd.f32 %v1576_v17, %v841_v33  ;;  %v839_v37 = vmax.f32 %v829_v34, 0.0 }
 0x571   :  { %v850_v38 = vmax.f32 %v846_v21, 0.0  ;;  %v844_v39 = vmul.f32 %v1570_v8, %v840_v35 }
 0x572   :  { %v849_v40 = vmax.f32 %v845_v36, 0.0  ;;  %v843_v41 = vmul.f32 %v1570_v8, %v839_v37 }
 0x573   :  { %v854_v42 = vsel %vm298_vm8, %v850_v38, -inf  ;;  %v848_v43 = vadd.f32 %v1576_v17, %v844_v39 }
 0x574   :  { %v853_v44 = vsel %vm298_vm8, %v849_v40, -inf  ;;  %v847_v2 = vadd.f32 %v1576_v17, %v843_v41 }
 0x575   :  { %v855_v45 = vmax.f32 %v853_v44, %v854_v42  ;;  %v852_v46 = vmax.f32 %v848_v43, 0.0 }
 0x576   :  { %v851_v47 = vmax.f32 %v847_v2, 0.0 }
 0x577   :  { %v856_v48 = vrot.slane %v855_v45, 4  ;;  %v863_v49 = vsel %vm298_vm8, %v852_v46, -inf }
 0x578   :  { %v862_v50 = vsel %vm298_vm8, %v851_v47, -inf }
 0x579   :  { %v857_v51 = vmax.f32 %v855_v45, %v856_v48  ;;  %v864_v52 = vmax.f32 %v862_v50, %v863_v49 }
 0x57b   :  { %v858_v53 = vrot.slane %v857_v51, 2  ;;  %v865_v8 = vrot.slane %v864_v52, 4 }
 0x57d   :  { %v859_v54 = vmax.f32 %v857_v51, %v858_v53  ;;  %v866_v56 = vmax.f32 %v864_v52, %v865_v8 }
 0x57f   :  { %v867_v58 = vrot.slane %v866_v56, 2  ;;  %v860_v57 = vrot.slane %v859_v54, 1 }
 0x581   :  { %v868_v59 = vmax.f32 %v866_v56, %v867_v58  ;;  %v861_v60 = vmax.f32 %v859_v54, %v860_v57 }
 0x583   :  { %v869_v55 = vrot.slane %v868_v59, 1 }
 0x585   :  { %v870_v17 = vmax.f32 %v868_v59, %v869_v55 }
 0x587   :  { %v871_v61 = vsel %vm195_vm5, %v861_v60, %v870_v17 }
 0x588   :  { %1159 = vmatmul.mubr.msk.f32.vlgmr.msra.gmra.mrb[8].mxu0 %vm298_vm8, %v871_v61 }
 0x65b   :  { %v952_v63 = vpop.f32.mrb[8].mxu0 }
 0x65c   :  { %v953_v0 = vadd.f32 %v998_v62, %v952_v63  ;;  %v1160_v5 = vpop.f32.mrb[9].mxu0 }
 0x65e   :  { %957 = vst.msk [vmem:[#allocation2] sm:$0x3] %vm956_vm13, %v953_v0 }
 0x65f   :  { %1262 = shalt.err (!%p1259_p4)
}
 0x660   :  { %s1263_s24 = scalar_lea.hbm %s1684_s14, 32 }
 0x661   :  { %p1264_p5 = scmp.ne.s32.totalorder %s1684_s14, %s1263_s24  ;;  %p1267_p6 = scmp.lt.u32.totalorder %s1263_s24, %s1684_s14 }
 0x663   :  { %p1269_p7 = pnand %p1267_p6, %p1264_p5 }
 0x665   :  { %1272 = shalt.err (!%p1269_p7)
}
 0x666   :  { %967 = dma.vmem_to_hbm [thread:$0]  %s965_s3, 32, %s1684_s14, [#allocation3]  }
 0x667   :  { %1273 = dma.done.wait [#allocation3], 32  }
 0x668   :  { %1274 = vsyncadd [#allocation3], 4294967264 }
 0x669   :  { %971 = vsyncpa [#allocation3], 1 }

</bundles_post_ra>
